<compile_context>
chip_gen: v5e
topology: v5e:2x2
jax: 0.10.0
libtpu: 0.0.40
codegen_flags: <defaults>
</compile_context>

<pallas_src>
import functools

import jax
import jax.numpy as jnp
from jax.experimental import pallas as pl
from jax.experimental.pallas import tpu as pltpu


SPARSITY_EPS = 1e-4
_TARGET_BLOCK_BYTES = 2 * 1024 * 1024   # ~2 MiB per block (85%+ of HBM roofline)


def _patch_scaler_kernel(th_ref, x_ref, scaler_ref, o_ref):
    """Fused scale + scale-gate + sparsity-gate + cls passthrough.

    th_ref     : (2,) SMEM  -> [scale_threshold, sparsity_threshold * D]
    x_ref      : (TB, N, D) VMEM block (cls token at row 0 of axis 1)
    scaler_ref : (N, D) VMEM, resident across the grid (row 0 == 1.0)
    o_ref      : (TB, N, D) VMEM output block
    """
    scale_th = th_ref[0]
    count_th = th_ref[1]                       # sparsity_threshold * D

    x_blk = x_ref[...]                          # (TB, N, D)
    scaler = scaler_ref[...]                    # (N, D) lane-dense, prebroadcast
    zero = jnp.zeros((), x_blk.dtype)

    # scale + scale gate (forward value of the straight-through gate)
    scaled = x_blk * scaler[None]               # broadcast over leading TB only
    gated = jnp.where(scaled > scale_th, scaled, zero)

    # per-token sparsity as an f32 count over the embedding dim (lane reduce)
    near_zero = (jnp.abs(gated) < SPARSITY_EPS).astype(jnp.float32)
    count = jnp.sum(near_zero, axis=-1, keepdims=True)        # (TB, N, 1)
    keep = count < count_th                                    # (TB, N, 1)

    patch_out = jnp.where(keep, gated, zero)

    # token index 0 (cls) bypasses both gates
    tok = jax.lax.broadcasted_iota(jnp.int32, x_blk.shape[:2] + (1,), 1)
    o_ref[...] = jnp.where(tok > 0, patch_out, x_blk)


def _pick_batch_tile(B, N, D, itemsize):
    per_batch_bytes = N * D * itemsize
    tb = max(1, _TARGET_BLOCK_BYTES // per_batch_bytes)
    tb = min(tb, B)
    # keep at least 2 grid steps when possible so v7x's two TensorCores both
    # get work on the "parallel" axis (free on single-TC v5e/v6e).
    if tb == B and B > 1:
        tb = pl.cdiv(B, 2)
    return int(tb)


def patch_scaler_forward(x, scaler, scale_threshold, sparsity_threshold,
                         *, granularity, is_base_model=False):
    """JAX/Pallas equivalent of PatchScaler.forward (forward values only).

    x: (B, 1 + patch_size, patch_dim)
    scaler: (patch_size,) for 'patch', (patch_size, patch_dim) for 'embedding'
    """
    if is_base_model:
        return x

    B, N, D = x.shape
    P = N - 1

    # Pre-broadcast the scaler once into a lane-dense (N, D) slab whose first
    # row is 1.0 (identity for the cls token). Stays VMEM-resident in-kernel.
    if granularity == "patch":
        body = jnp.broadcast_to(scaler.reshape(P, 1), (P, D))
    elif granularity == "embedding":
        body = scaler.reshape(P, D)
    else:
        raise ValueError(f"Unknown granularity: {granularity}")
    scaler_full = jnp.concatenate(
        [jnp.ones((1, D), x.dtype), body.astype(x.dtype)], axis=0)

    # Pack thresholds (sparsity threshold pre-scaled by D: count vs mean).
    th = jnp.stack([jnp.asarray(scale_threshold, jnp.float32),
                    jnp.asarray(sparsity_threshold, jnp.float32)
                    * jnp.float32(D)])

    itemsize = jnp.dtype(x.dtype).itemsize
    TB = _pick_batch_tile(B, N, D, itemsize)
    grid = (pl.cdiv(B, TB),)

    bytes_accessed = 2 * B * N * D * itemsize + N * D * itemsize
    cost = pl.CostEstimate(flops=8 * B * N * D, transcendentals=0,
                           bytes_accessed=bytes_accessed)

    out = pl.pallas_call(
        _patch_scaler_kernel,
        out_shape=jax.ShapeDtypeStruct((B, N, D), x.dtype),
        grid=grid,
        in_specs=[
            pl.BlockSpec(memory_space=pltpu.MemorySpace.SMEM),      # thresholds
            pl.BlockSpec((TB, N, D), lambda b: (b, 0, 0)),          # x (full tokens)
            pl.BlockSpec((N, D), lambda b: (0, 0)),                 # scaler (resident)
        ],
        out_specs=pl.BlockSpec((TB, N, D), lambda b: (b, 0, 0)),
        compiler_params=pltpu.CompilerParams(
            dimension_semantics=("parallel",)),
        cost_estimate=cost,
    )(th, x, scaler_full)

    return out


def _reference_forward(x, scaler, scale_threshold, sparsity_threshold, granularity):
    """Pure-JAX reference mirroring the PyTorch forward values."""
    cls = x[:, :1, :]
    patch = x[:, 1:, :]
    if granularity == "patch":
        scaled = patch * scaler.reshape(1, -1, 1)
    else:
        scaled = patch * scaler.reshape(1, patch.shape[1], patch.shape[2])
    scale_gate = (scaled > scale_threshold).astype(scaled.dtype)
    gated = scaled * scale_gate
    sparsity = jnp.mean((jnp.abs(gated) < SPARSITY_EPS).astype(jnp.float32),
                        axis=-1, keepdims=True)
    sp_gate = (sparsity < sparsity_threshold).astype(scaled.dtype)
    return jnp.concatenate((cls, gated * sp_gate), axis=1)


if __name__ == "__main__":
    # Small but lane-dense demo shapes (D multiple of 128 for unmasked stores).
    patch_size = 8
    patch_dim = 128
    batch = 4
    init_scale_threshold = 0.1
    init_sparsity_threshold = 0.6

    key = jax.random.PRNGKey(0)
    kx, kp, ke = jax.random.split(key, 3)
    x = jax.random.normal(kx, (batch, 1 + patch_size, patch_dim), jnp.float32)

    scalers = {
        "patch": jax.random.uniform(kp, (patch_size,), jnp.float32,
                                    minval=0.2, maxval=0.8),
        "embedding": jax.random.uniform(ke, (patch_size, patch_dim), jnp.float32,
                                        minval=0.2, maxval=0.8),
    }

    for granularity, scaler in scalers.items():
        fwd = jax.jit(functools.partial(patch_scaler_forward,
                                        granularity=granularity,
                                        is_base_model=False))
        out = jax.block_until_ready(
            fwd(x, scaler, init_scale_threshold, init_sparsity_threshold))
        ref = _reference_forward(x, scaler, init_scale_threshold,
                                 init_sparsity_threshold, granularity)
        assert out.shape == x.shape
        assert jnp.allclose(out, ref, atol=1e-6), f"mismatch ({granularity})"

    print("KERNEL_OK")
</pallas_src>

<mosaic_0001>
module attributes {stable_mosaic.version = 11 : i64} {
  func.func @_patch_scaler_kernel(%arg0: i32, %arg1: memref<2xf32, #tpu.memory_space<smem>>, %arg2: memref<2x9x128xf32, #tpu.memory_space<vmem>>, %arg3: memref<9x128xf32, #tpu.memory_space<vmem>>, %arg4: memref<2x9x128xf32, #tpu.memory_space<vmem>>) attributes {dimension_semantics = [#tpu.dimension_semantics<parallel>], iteration_bounds = array<i64: 2>, scalar_prefetch = 0 : i64, scratch_operands = 0 : i64, tpu.core_type = #tpu.core_type<tc>, window_params = [{transform_indices = @transform_0, window_bounds = array<i64: 2>}, {transform_indices = @transform_1, window_bounds = array<i64: 2, 9, 128>}, {pipeline_mode = #tpu.pipeline_mode<synchronous>, transform_indices = @transform_2, window_bounds = array<i64: 9, 128>}, {transform_indices = @transform_3, window_bounds = array<i64: 2, 9, 128>}]} {
    %c0 = arith.constant 0 : index
    %0 = memref.load %arg1[%c0] : memref<2xf32, #tpu.memory_space<smem>>
    %c1 = arith.constant 1 : index
    %1 = memref.load %arg1[%c1] : memref<2xf32, #tpu.memory_space<smem>>
    %c0_0 = arith.constant 0 : index
    %c0_1 = arith.constant 0 : index
    %c0_2 = arith.constant 0 : index
    %2 = vector.load %arg2[%c0_0, %c0_1, %c0_2] : memref<2x9x128xf32, #tpu.memory_space<vmem>>, vector<2x9x128xf32>
    %c0_3 = arith.constant 0 : index
    %c0_4 = arith.constant 0 : index
    %3 = vector.load %arg3[%c0_3, %c0_4] : memref<9x128xf32, #tpu.memory_space<vmem>>, vector<9x128xf32>
    %4 = vector.shape_cast %3 : vector<9x128xf32> to vector<1x9x128xf32>
    %5 = vector.broadcast %4 : vector<1x9x128xf32> to vector<2x9x128xf32>
    %6 = arith.mulf %2, %5 : vector<2x9x128xf32>
    %7 = vector.broadcast %0 : f32 to vector<2x9x128xf32>
    %8 = arith.cmpf ogt, %6, %7 : vector<2x9x128xf32>
    %cst = arith.constant 0.000000e+00 : f32
    %9 = vector.broadcast %cst : f32 to vector<2x9x128xf32>
    %10 = arith.select %8, %6, %9 : vector<2x9x128xi1>, vector<2x9x128xf32>
    %11 = math.absf %10 : vector<2x9x128xf32>
    %cst_5 = arith.constant 9.99999974E-5 : f32
    %12 = vector.broadcast %cst_5 : f32 to vector<2x9x128xf32>
    %13 = arith.cmpf olt, %11, %12 : vector<2x9x128xf32>
    %14 = arith.extui %13 : vector<2x9x128xi1> to vector<2x9x128xi32>
    %15 = arith.sitofp %14 : vector<2x9x128xi32> to vector<2x9x128xf32>
    %cst_6 = arith.constant dense<0.000000e+00> : vector<2x9xf32>
    %16 = vector.multi_reduction <add>, %15, %cst_6 [2] : vector<2x9x128xf32> to vector<2x9xf32>
    %17 = vector.shape_cast %16 : vector<2x9xf32> to vector<2x9x1xf32>
    %18 = vector.broadcast %1 : f32 to vector<2x9x1xf32>
    %19 = arith.cmpf olt, %17, %18 : vector<2x9x1xf32>
    %cst_7 = arith.constant 0.000000e+00 : f32
    %20 = vector.shape_cast %19 : vector<2x9x1xi1> to vector<2x9x1xi1>
    %21 = vector.broadcast %20 : vector<2x9x1xi1> to vector<2x9x128xi1>
    %22 = vector.broadcast %cst_7 : f32 to vector<2x9x128xf32>
    %23 = arith.select %21, %10, %22 : vector<2x9x128xi1>, vector<2x9x128xf32>
    %24 = tpu.iota {dimensions = array<i32: 1>} : vector<2x9x1xi32>
    %c0_i32 = arith.constant 0 : i32
    %25 = vector.broadcast %c0_i32 : i32 to vector<2x9x1xi32>
    %26 = arith.cmpi sgt, %24, %25 : vector<2x9x1xi32>
    %27 = vector.shape_cast %26 : vector<2x9x1xi1> to vector<2x9x1xi1>
    %28 = vector.broadcast %27 : vector<2x9x1xi1> to vector<2x9x128xi1>
    %29 = arith.select %28, %23, %2 : vector<2x9x128xi1>, vector<2x9x128xf32>
    %c0_8 = arith.constant 0 : index
    %c0_9 = arith.constant 0 : index
    %c0_10 = arith.constant 0 : index
    %30 = vector.load %arg4[%c0_8, %c0_9, %c0_10] : memref<2x9x128xf32, #tpu.memory_space<vmem>>, vector<2x9x128xf32>
    tpu.vector_store %arg4[%c0_8, %c0_9, %c0_10], %29 {strides = array<i32>} : memref<2x9x128xf32, #tpu.memory_space<vmem>>, vector<2x9x128xf32>,
    return
  }
  func.func @transform_0(%arg0: i32) -> i32 {
    %c0_i32 = arith.constant 0 : i32
    %c0_i32_0 = arith.constant 0 : i32
    return %c0_i32 : i32
  }
  func.func @transform_1(%arg0: i32) -> (i32, i32, i32) {
    %c0_i32 = arith.constant 0 : i32
    %c0_i32_0 = arith.constant 0 : i32
    %c0_i32_1 = arith.constant 0 : i32
    return %arg0, %c0_i32, %c0_i32_0 : i32, i32, i32
  }
  func.func @transform_2(%arg0: i32) -> (i32, i32) {
    %c0_i32 = arith.constant 0 : i32
    %c0_i32_0 = arith.constant 0 : i32
    %c0_i32_1 = arith.constant 0 : i32
    return %c0_i32, %c0_i32_0 : i32, i32
  }
  func.func @transform_3(%arg0: i32) -> (i32, i32, i32) {
    %c0_i32 = arith.constant 0 : i32
    %c0_i32_0 = arith.constant 0 : i32
    %c0_i32_1 = arith.constant 0 : i32
    return %arg0, %c0_i32, %c0_i32_0 : i32, i32, i32
  }
}

</mosaic_0001>

<bundles_post_ra>
// kernel: patch_scaler_forward.1
= control target key start
LH: loop header
LB: loop body
LE: loop exit
PB: predicated region body
PF: predicated region fallthrough
CT: control target
= control target key end

     0   :  { %8 = vsyncpa [#allocation3], 0  ;;  %s436_s12 = smov 0   ;;  %s469_s0 = inlined_call_operand.vmem [shape: f32[2], index: 0, kind: input, shape index: {}]   ;;  %s470_s1 = inlined_call_operand.vmem [shape: f32[4,9,128], index: 1, kind: input, shape index: {}]   ;;  %s471_s2 = inlined_call_operand.vmem [shape: f32[9,128], index: 2, kind: input, shape index: {}]   ;;  %s472_s3 = inlined_call_operand.vmem [shape: f32[4,9,128], index: 3, kind: output, shape index: {}]  }
   0x1 LB: > { %s345_s13 = sadd.s32 4294967295, %s412_s12   ;;  %p347_p0 = scmp.ge.s32.totalorder %s412_s12, 1  ;;  %s412_s12 = sphi %s436_s12, %s14_s12  }
   0x2   : > { %p113_p1 = scmp.lt.s32.totalorder %s412_s12, 3  ;;  %s125_s16 = sshll.u32 %s469_s0, 4  ;;  %s126_s16 = int_to_ptr.vmem [resolvable:$true] %s125_s16 }
   0x3   : > { %p375_p3 = scmp.eq.s32.totalorder %s345_s13, 0  ;;  %s414_s17 = smov [#allocation2]  }
   0x4   : > { %p114_p2 = pnand %p347_p0, %p113_p1 }
   0x6   : > { %p371_p4 = pneg %p114_p2  ;;  %151 = sbr.rel (%p114_p2) target bundleno = 157 (0x9d), region = 32 }
   0x8   : > { %p372_p5 = pnand %p375_p3, %p371_p4 }
   0xa   : > { %374 = dma.vmem_to_smem (!%p372_p5), %s126_s16, 16, %s414_s17, [#allocation3]  }
   0xb   : > { %407 = dma.done.wait (%p375_p3), [#allocation3], 16  }
   0xc   : > { %409 = vsyncadd (%p375_p3), [#allocation3], 4294967280 }
   0xd   : > { %158 = sfence }
   0xe   : > { %s352_s18 = sshll.u32 %s345_s13, 1  ;;  %s193_s19 = sld [smem:[#allocation2]]  ;;  %v199_v0 = vld [vmem:[%s471_s2] sm:$0xff]  ;;  %v200_v1 = vld [vmem:[%s471_s2 + $0x8] sm:$0x1]  ;;  %v415_v18 = vmov 0.0   ;;  %v258_v26 = vlaneseq }
   0xf   : > { %p180_p6 = scmp.lt.s32.totalorder %s352_s18, 3  ;;  %vm232_vm8 = vcmask 1040384   ;;  %s358_s28 = sld [smem:[#allocation2 + $0x1]] }
  0x10   : > { %v259_v27 = vshrl.u32 %v258_v26, 7 }
  0x11   : > { %s474_s18 = smov (!%p180_p6, %s352_s18), 3 }
  0x12   : > { %s365_s20 = sshll.u32 %s474_s18, 4  ;;  %vm261_vm9 = vcmp.gt.s32.totalorder %v259_v27, 0 }
  0x13   : > { %s184_s27 = scalar_lea.vmem %s470_s1, %s365_s20  ;;  %s191_s4 = scalar_lea.vmem %s472_s3, %s365_s20 }
  0x14   : > { %v195_v2 = vld [vmem:[%s184_s27] sm:$0xff]  ;;  %v205_v3 = vstv %s193_s19  ;;  %v197_v4 = vld [vmem:[%s184_s27 + $0x10] sm:$0xff]  ;;  %v196_v5 = vld [vmem:[%s184_s27 + $0x8] sm:$0x1] }
  0x15   : > { %v201_v6 = vmul.f32 %v199_v0, %v195_v2  ;;  %v203_v7 = vmul.f32 %v199_v0, %v197_v4  ;;  %v202_v8 = vmul.f32 %v200_v1, %v196_v5  ;;  %v198_v9 = vld [vmem:[%s184_s27 + $0x18] sm:$0x1]  ;;  %v241_v28 = vstv %s358_s28 }
  0x16   : > { %v204_v10 = vmul.f32 %v200_v1, %v198_v9 }
  0x17   : > { %vm206_vm0 = vcmp.gt.f32.partialorder %v201_v6, %v205_v3  ;;  %vm208_vm1 = vcmp.gt.f32.partialorder %v203_v7, %v205_v3  ;;  %vm207_vm2 = vcmp.gt.f32.partialorder %v202_v8, %v205_v3 }
  0x18   : > { %v210_v11 = vsel %vm206_vm0, %v201_v6, 0.0  ;;  %v212_v12 = vsel %vm208_vm1, %v203_v7, 0.0  ;;  %v211_v13 = vsel %vm207_vm2, %v202_v8, 0.0  ;;  %vm209_vm3 = vcmp.gt.f32.partialorder %v204_v10, %v205_v3 }
  0x19   : > { %v214_v14 = vand.u32 2147483647, %v210_v11  ;;  %v216_v15 = vand.u32 2147483647, %v212_v12  ;;  %v215_v16 = vand.u32 2147483647, %v211_v13 }
  0x1a   : > { %v213_v17 = vsel %vm209_vm3, %v204_v10, 0.0 }
  0x1b   : > { %vm218_vm4 = vcmp.lt.f32.partialorder %v214_v14, 0.0001  ;;  %vm220_vm5 = vcmp.lt.f32.partialorder %v216_v15, 0.0001  ;;  %vm219_vm6 = vcmp.lt.f32.partialorder %v215_v16, 0.0001 }
  0x1c   : > { %v359_v19 = vsel %vm218_vm4, 1.0, %v415_v18  ;;  %v361_v20 = vsel %vm220_vm5, 1.0, %v415_v18  ;;  %v217_v21 = vand.u32 2147483647, %v213_v17  ;;  %v360_v22 = vsel %vm219_vm6, 1.0, %v415_v18 }
  0x1d   : > { %230 = vadd.xlane.f32.xlu0 %v359_v19  ;;  %236 = vadd.xlane.f32.xlu1 %v361_v20  ;;  %v233_v24 = vsel %vm232_vm8, %v360_v22, 0.0 }
  0x1e   : > { %vm221_vm7 = vcmp.lt.f32.partialorder %v217_v21, 0.0001 }
  0x1f   : > { %v362_v23 = vsel %vm221_vm7, 1.0, %v415_v18 }
  0x20   : > { %v238_v25 = vsel %vm232_vm8, %v362_v23, 0.0 }
  0x25   : > { %234 = vadd.xlane.f32.xlu0 %v233_v24  ;;  %239 = vadd.xlane.f32.xlu1 %v238_v25 }
  0x90   : > { %v231_v29 = vpop.xlane.xlu0 %230  ;;  %v237_v30 = vpop.xlane.xlu1 %236 }
  0x91   : > { %vm242_vm10 = vcmp.lt.f32.partialorder %v231_v29, %v241_v28  ;;  %vm244_vm11 = vcmp.lt.f32.partialorder %v237_v30, %v241_v28 }
  0x92   : > { %v254_v31 = vsel %vm242_vm10, %v210_v11, 0.0  ;;  %v256_v32 = vsel %vm244_vm11, %v212_v12, 0.0 }
  0x93   : > { %v267_v33 = vsel %vm261_vm9, %v254_v31, %v195_v2  ;;  %v269_v34 = vsel %vm261_vm9, %v256_v32, %v197_v4 }
  0x94   : > { %271 = vst [vmem:[%s191_s4] sm:$0xff] %v267_v33 }
  0x95   : > { %273 = vst [vmem:[%s191_s4 + $0x10] sm:$0xff] %v269_v34 }
  0x98   : > { %v235_v35 = vpop.xlane.xlu0 %234  ;;  %v240_v36 = vpop.xlane.xlu1 %239 }
  0x99   : > { %vm243_vm12 = vcmp.lt.f32.partialorder %v235_v35, %v241_v28  ;;  %vm245_vm13 = vcmp.lt.f32.partialorder %v240_v36, %v241_v28 }
  0x9a   : > { %v255_v37 = vsel %vm243_vm12, %v211_v13, 0.0  ;;  %v257_v38 = vsel %vm245_vm13, %v213_v17, 0.0 }
  0x9b   : > { %272 = vst [vmem:[%s191_s4 + $0x8] sm:$0x1] %v255_v37 }
  0x9c   : > { %274 = vst [vmem:[%s191_s4 + $0x18] sm:$0x1] %v257_v38 }
  0x9d PF: > { %s14_s12 = sadd.s32 1, %s412_s12  }
  0x9e   : > { %p11_p7 = scmp.ge.s32.totalorder %s14_s12, 4  }
  0xa0   :  { %13 = sbr.rel (!%p11_p7) target bundleno = 1 (0x1), region = 67 }
  0xa5   :  { %299 = vsyncpa [#allocation3], 1 }
  0xa6   :  { %301 = vsyncpa [#allocation3 + $0x1], 1 }

</bundles_post_ra>
